<compile_context>
chip_gen: v6e
topology: v6e:2x2x1
jax: 0.10.0
libtpu: 0.0.40
codegen_flags: <defaults>
</compile_context>

<pallas_src>
import functools

import jax
import jax.numpy as jnp
from jax import lax
from jax.experimental import pallas as pl
from jax.experimental.pallas import tpu as pltpu

_LANES = 128
_SUBLANES = 8
_VMEM_BUDGET_BYTES = 8 * 1024 * 1024  # 2x input buffers + f32 accumulator


def _round_up(n, m):
    return ((n + m - 1) // m) * m


def _style_kernel(x_ref, o_ref, acc_ref, *, inv_s):
    # x_ref:   (1, C, R_TILE, 128) input tile
    # o_ref:   (1, C, 1) output block (resident across the reduction axis)
    # acc_ref: (C, R_TILE, 128) f32 persistent accumulator
    s = pl.program_id(1)

    @pl.when(s == 0)
    def _init():
        acc_ref[...] = jnp.zeros_like(acc_ref)

    # Hot loop: vld + VPU adds only; no cross-lane reduce per step.
    acc_ref[...] += x_ref[0].astype(jnp.float32)

    @pl.when(s == pl.num_programs(1) - 1)
    def _finalize():
        # Single cross-sublane/lane reduce in the epilogue.
        per_lane = jnp.sum(acc_ref[...], axis=1)                      # (C, 128)
        style = jnp.sum(per_lane, axis=-1, keepdims=True) * inv_s     # (C, 1)
        # TODO(synk): no epsilon (matches torch); an all-zero volume -> NaN.
        sq = jnp.sum(style * style)                                   # scalar
        normed = style * lax.rsqrt(sq)                                # (C, 1)
        o_ref[...] = normed[None].astype(o_ref.dtype)                 # (1, C, 1)


def global_locally_enhanced_volume_style(x):
    """x: (B, C, H, W, D) -> (B, C) L2-normalized global style vector."""
    B, C, H, W, D = x.shape
    S = H * W * D
    itemsize = jnp.dtype(x.dtype).itemsize

    # Tile the flattened spatial axis as (rows, 128); pick a sublane-row tile
    # so (2 x input buffer + f32 accumulator) fits the VMEM budget.
    rows = -(-S // _LANES)  # cdiv
    bytes_per_row_in = C * _LANES * itemsize
    bytes_per_row_acc = C * _LANES * 4
    r_by_budget = _VMEM_BUDGET_BYTES // (2 * bytes_per_row_in + bytes_per_row_acc)
    r_target = max(_SUBLANES, (r_by_budget // _SUBLANES) * _SUBLANES)
    r_tile = min(r_target, _round_up(rows, _SUBLANES))
    rows_pad = _round_up(rows, r_tile)
    s_pad = rows_pad * _LANES
    n_s = rows_pad // r_tile

    # Zero-padding is sum-safe; the kernel divides by the true S.
    x_flat = x.reshape(B, C, S)
    if s_pad != S:
        x_flat = jnp.pad(x_flat, ((0, 0), (0, 0), (0, s_pad - S)))
    x_tiled = x_flat.reshape(B, C, rows_pad, _LANES)

    # Raise the scoped-VMEM limit only if the (already minimal) working set
    # needs it; cap at the smallest physical VMEM (v7x: 64 MiB per core).
    needed = (2 * r_tile * bytes_per_row_in + r_tile * bytes_per_row_acc
              + (1 << 20))
    vmem_limit = int(min(64 * 1024 * 1024, max(32 * 1024 * 1024, needed)))

    kernel = functools.partial(_style_kernel, inv_s=1.0 / float(S))

    out = pl.pallas_call(
        kernel,
        out_shape=jax.ShapeDtypeStruct((B, C, 1), x.dtype),
        grid_spec=pltpu.PrefetchScalarGridSpec(
            num_scalar_prefetch=0,
            grid=(B, n_s),
            in_specs=[
                pl.BlockSpec((1, C, r_tile, _LANES), lambda b, s: (b, 0, s, 0)),
            ],
            out_specs=pl.BlockSpec((1, C, 1), lambda b, s: (b, 0, 0)),
            scratch_shapes=[pltpu.VMEM((C, r_tile, _LANES), jnp.float32)],
        ),
        compiler_params=pltpu.CompilerParams(
            dimension_semantics=("parallel", "arbitrary"),
            vmem_limit_bytes=vmem_limit,
        ),
    )(x_tiled)
    return out.reshape(B, C)


def _reference(x):
    # Pure-JAX reference mirroring the PyTorch module.
    B, C = x.shape[0], x.shape[1]
    style = jnp.mean(x.reshape(B, C, -1), axis=-1)
    return style / jnp.sqrt(jnp.sum(style ** 2, axis=1, keepdims=True))


if __name__ == "__main__":
    key = jax.random.PRNGKey(0)
    B, C, H, W, D = 2, 4, 8, 8, 8
    x = jax.random.normal(key, (B, C, H, W, D), dtype=jnp.float32)

    out = global_locally_enhanced_volume_style(x)
    out = jax.block_until_ready(out)

    ref = _reference(x)
    assert out.shape == (B, C), out.shape
    assert jnp.allclose(out, ref, atol=1e-5, rtol=1e-5), (
        "mismatch", jnp.max(jnp.abs(out - ref)))

    print("KERNEL_OK")
</pallas_src>

<mosaic_0001>
module attributes {stable_mosaic.version = 11 : i64} {
  func.func @_style_kernel(%arg0: i32, %arg1: i32, %arg2: memref<1x4x8x128xf32, #tpu.memory_space<vmem>>, %arg3: memref<1x4x1xf32, #tpu.memory_space<vmem>>, %arg4: memref<4x8x128xf32, #tpu.memory_space<vmem>>) attributes {dimension_semantics = [#tpu.dimension_semantics<parallel>, #tpu.dimension_semantics<arbitrary>], iteration_bounds = array<i64: 2, 1>, scalar_prefetch = 0 : i64, scratch_operands = 1 : i64, tpu.core_type = #tpu.core_type<tc>, window_params = [{transform_indices = @transform_0, window_bounds = array<i64: 1, 4, 8, 128>}, {transform_indices = @transform_1, window_bounds = array<i64: 1, 4, 1>}]} {
    %c0_i32 = arith.constant 0 : i32
    %0 = arith.cmpi eq, %arg1, %c0_i32 : i32
    %1 = arith.extui %0 : i1 to i32
    %c0_i32_0 = arith.constant 0 : i32
    %2 = arith.cmpi ne, %1, %c0_i32_0 : i32
    scf.if %2 {
      %cst = arith.constant 0.000000e+00 : f32
      %11 = vector.broadcast %cst : f32 to vector<4x8x128xf32>
      %c0_12 = arith.constant 0 : index
      %c0_13 = arith.constant 0 : index
      %c0_14 = arith.constant 0 : index
      %12 = vector.load %arg4[%c0_12, %c0_13, %c0_14] : memref<4x8x128xf32, #tpu.memory_space<vmem>>, vector<4x8x128xf32>
      tpu.vector_store %arg4[%c0_12, %c0_13, %c0_14], %11 {strides = array<i32>} : memref<4x8x128xf32, #tpu.memory_space<vmem>>, vector<4x8x128xf32>,
    } else {
    }
    %c0 = arith.constant 0 : index
    %c0_1 = arith.constant 0 : index
    %c0_2 = arith.constant 0 : index
    %3 = vector.load %arg4[%c0, %c0_1, %c0_2] : memref<4x8x128xf32, #tpu.memory_space<vmem>>, vector<4x8x128xf32>
    %c0_3 = arith.constant 0 : index
    %c0_4 = arith.constant 0 : index
    %c0_5 = arith.constant 0 : index
    %c0_6 = arith.constant 0 : index
    %4 = vector.load %arg2[%c0_3, %c0_4, %c0_5, %c0_6] : memref<1x4x8x128xf32, #tpu.memory_space<vmem>>, vector<1x4x8x128xf32>
    %5 = vector.shape_cast %4 : vector<1x4x8x128xf32> to vector<4x8x128xf32>
    %6 = arith.addf %3, %5 : vector<4x8x128xf32>
    %c0_7 = arith.constant 0 : index
    %c0_8 = arith.constant 0 : index
    %c0_9 = arith.constant 0 : index
    %7 = vector.load %arg4[%c0_7, %c0_8, %c0_9] : memref<4x8x128xf32, #tpu.memory_space<vmem>>, vector<4x8x128xf32>
    tpu.vector_store %arg4[%c0_7, %c0_8, %c0_9], %6 {strides = array<i32>} : memref<4x8x128xf32, #tpu.memory_space<vmem>>, vector<4x8x128xf32>,
    %c0_i32_10 = arith.constant 0 : i32
    %8 = arith.cmpi eq, %arg1, %c0_i32_10 : i32
    %9 = arith.extui %8 : i1 to i32
    %c0_i32_11 = arith.constant 0 : i32
    %10 = arith.cmpi ne, %9, %c0_i32_11 : i32
    scf.if %10 {
      %c0_12 = arith.constant 0 : index
      %c0_13 = arith.constant 0 : index
      %c0_14 = arith.constant 0 : index
      %11 = vector.load %arg4[%c0_12, %c0_13, %c0_14] : memref<4x8x128xf32, #tpu.memory_space<vmem>>, vector<4x8x128xf32>
      %cst = arith.constant dense<0.000000e+00> : vector<4x128xf32>
      %12 = vector.multi_reduction <add>, %11, %cst [1] : vector<4x8x128xf32> to vector<4x128xf32>
      %cst_15 = arith.constant dense<0.000000e+00> : vector<4xf32>
      %13 = vector.multi_reduction <add>, %12, %cst_15 [1] : vector<4x128xf32> to vector<4xf32>
      %14 = vector.shape_cast %13 : vector<4xf32> to vector<4x1xf32>
      %cst_16 = arith.constant 0.001953125 : f32
      %15 = vector.broadcast %cst_16 : f32 to vector<4x1xf32>
      %16 = arith.mulf %14, %15 : vector<4x1xf32>
      %17 = arith.mulf %16, %16 : vector<4x1xf32>
      %18 = vector.shape_cast %17 : vector<4x1xf32> to vector<1x4x1xf32>
      %cst_17 = arith.constant dense<0.000000e+00> : vector<1xf32>
      %19 = vector.multi_reduction <add>, %18, %cst_17 [1, 2] : vector<1x4x1xf32> to vector<1xf32>
      %20 = vector.shape_cast %19 : vector<1xf32> to vector<1x1x1xf32>
      %21 = vector.extract %20[0, 0, 0] : f32 from vector<1x1x1xf32>
      %22 = math.rsqrt %21 : f32
      %23 = vector.broadcast %22 : f32 to vector<4x1xf32>
      %24 = arith.mulf %16, %23 : vector<4x1xf32>
      %25 = vector.shape_cast %24 : vector<4x1xf32> to vector<1x4x1xf32>
      %c0_18 = arith.constant 0 : index
      %c0_19 = arith.constant 0 : index
      %c0_20 = arith.constant 0 : index
      %26 = vector.load %arg3[%c0_18, %c0_19, %c0_20] : memref<1x4x1xf32, #tpu.memory_space<vmem>>, vector<1x4x1xf32>
      tpu.vector_store %arg3[%c0_18, %c0_19, %c0_20], %25 {strides = array<i32>} : memref<1x4x1xf32, #tpu.memory_space<vmem>>, vector<1x4x1xf32>,
    } else {
    }
    return
  }
  func.func @transform_0(%arg0: i32, %arg1: i32) -> (i32, i32, i32, i32) {
    %c0_i32 = arith.constant 0 : i32
    %c0_i32_0 = arith.constant 0 : i32
    %c0_i32_1 = arith.constant 0 : i32
    return %arg0, %c0_i32, %arg1, %c0_i32_0 : i32, i32, i32, i32
  }
  func.func @transform_1(%arg0: i32, %arg1: i32) -> (i32, i32, i32) {
    %c0_i32 = arith.constant 0 : i32
    %c0_i32_0 = arith.constant 0 : i32
    %c0_i32_1 = arith.constant 0 : i32
    return %arg0, %c0_i32, %c0_i32_0 : i32, i32, i32
  }
}

</mosaic_0001>

<bundles_post_ra>
// kernel: tpu_custom_call.1
= control target key start
LH: loop header
LB: loop body
LE: loop exit
PB: predicated region body
PF: predicated region fallthrough
CT: control target
= control target key end

     0   :  { %6 = vsyncpa [#allocation4], 0  ;;  %s581_s0 = inlined_call_operand.hbm [shape: f32[2,4,8,128], index: 0, kind: input, shape index: {}]   ;;  %s582_s1 = inlined_call_operand.vmem [shape: f32[2,4,1], index: 1, kind: output, shape index: {}]  }
   0x1   :  { %8 = vsyncpa [#allocation4 + $0x1], 0  ;;  %s483_s6 = smov 0   ;;  %s485_s7 = smov 0  }
   0x2   :  { %s487_s8 = smov 0   ;;  %s489_s9 = smov 0  }
   0x3   :  { %s491_s10 = smov 0   ;;  %s493_s11 = smov 0  }
   0x4 LB: > { %s314_s12 = sadd.s32 4294967295, %s468_s11   ;;  %s26_s13 = sadd.s32 1, %s464_s10  ;;  %s468_s11 = sphi %s493_s11, %s14_s11   ;;  %s464_s10 = sphi %s491_s10, %s590_s10   ;;  %s460_s9 = sphi %s489_s9, %s589_s9   ;;  %s456_s8 = sphi %s487_s8, %s588_s8   ;;  %s452_s7 = sphi %s485_s7, %s587_s7   ;;  %s448_s6 = sphi %s483_s6, %s586_s6  }
   0x5   : > { %p28_p0 = scmp.ge.s32.totalorder %s26_s13, 2  ;;  %s35_s14 = sadd.s32 1, %s456_s8 }
   0x6   : > { %p42_p1 = scmp.ne.s32.totalorder %s456_s8, %s452_s7  ;;  %p43_p2 = scmp.eq.s32.totalorder %s468_s11, 0 }
   0x7   : > { %s592_s13 = smov (%p28_p0, %s26_s13), 0  ;;  %p48_p4 = scmp.ne.s32.totalorder %s452_s7, %s448_s6 }
   0x8   : > { %p519_p3 = por %p43_p2, %p42_p1  ;;  %s30_s16 = ssub.s32 %s464_s10, %s592_s13 }
   0x9   : > { %p49_p5 = scmp.eq.s32.totalorder %s314_s12, 0  ;;  %p33_p6 = scmp.eq.s32.totalorder %s30_s16, 0 }
   0xa   : > { %p337_p8 = scmp.lt.s32.totalorder %s468_s11, 2  ;;  %s98_s19 = sand.u32 1, %s456_s8  }
   0xb   : > { %p526_p7 = por %p49_p5, %p48_p4  ;;  %s326_s20 = sshll.u32 %s464_s10, 9 }
   0xc   : > { %s532_s18 = scalar_select %p33_p6, %s456_s8, %s35_s14  }
   0xd   : > { %s318_s21 = sshll.u32 %s98_s19, 5  ;;  %s109_s24 = scalar_lea.hbm %s581_s0, %s326_s20 }
   0xe   : > { %s102_s25 = scalar_lea.vmem [#allocation3], %s318_s21  ;;  %p541_p9 = pnand %p337_p8, %p519_p3 }
   0xf   : > { %s110_s26 = sshll.u32 %s102_s25, 4  ;;  %s99_s28 = scalar_lea.sflag [#allocation4], %s98_s19  ;;  %s111_s26 = int_to_ptr.vmem [resolvable:$true] %s110_s26 }
  0x10   : > { %p392_p10 = pneg %p541_p9  ;;  %s403_s29 = scalar_lea.vmem %s111_s26, 512 }
  0x11   : > { %p404_p11 = scmp.ne.s32.totalorder %s111_s26, %s403_s29  ;;  %s470_s30 = smov [#allocation3]  }
  0x12   : > { %s408_s2 = sshll.u32 %s470_s30, 4  ;;  %s409_s2 = int_to_ptr.vmem [resolvable:$false] %s408_s2 }
  0x13   : > { %p406_p12 = pnand %p404_p11, %p392_p10  ;;  %s410_s3 = scalar_lea.vmem %s409_s2, 1024 }
  0x14   : > { %p411_p0 = scmp.lt.s32.totalorder %s111_s26, %s409_s2  ;;  %p412_p1 = scmp.lt.s32.totalorder %s410_s3, %s403_s29 }
  0x15   : > { %p407_p13 = pneg %p406_p12 }
  0x16   : > { %p413_p2 = por %p412_p1, %p411_p0 }
  0x18   : > { %p414_p3 = pnand %p413_p2, %p407_p13 }
  0x1a   : > { %417 = shalt.err (!%p414_p3)
}
  0x1b   : > { %s471_s4 = smov 128   ;;  %s472_s5 = smov 8  }
  0x1c   : > { %336 = dma.hbm_to_vmem [thread:$0]  (!%p541_p9), %s109_s24, 512, %s111_s26, %s99_s28, %s471_s4, %s471_s4, %s472_s5  }
  0x1d   : > { %p321_p4 = scmp.ge.s32.totalorder %s468_s11, 1  ;;  %p118_p5 = scmp.lt.s32.totalorder %s468_s11, 3 }
  0x1f   : > { %p119_p6 = pnand %p321_p4, %p118_p5 }
  0x20   : > { %s124_s6 = sand.u32 (!%p119_p6), 1, %s452_s7  }
  0x21   : > { %122 = sbr.rel (%p119_p6) target bundleno = 468 (0x1d4), region = 24  ;;  %s322_s12 = sshll.u32 (!%p119_p6), %s124_s6, 5 }
  0x22   : > { %s125_s14 = scalar_lea.sflag (!%p119_p6), [#allocation4], %s124_s6  ;;  %s128_s15 = scalar_lea.vmem (!%p119_p6), [#allocation3], %s322_s12 }
  0x26   : > { %443 = dma.done.wait (%p526_p7), %s125_s14, 512  }
  0x27   : > { %445 = vsyncadd (%p526_p7), %s125_s14, 4294966784  ;;  %v162_v0 = vld [vmem:[%s128_s15] sm:$0xff]  ;;  %v163_v1 = vld [vmem:[%s128_s15 + $0x8] sm:$0xff]  ;;  %vm209_vm0 = vcmask 1041409   ;;  %vm211_vm1 = vcmask 1042434   ;;  %vm213_vm2 = vcmask 1043459  }
  0x28   : > { %v164_v2 = vld [vmem:[%s128_s15 + $0x10] sm:$0xff]  ;;  %v165_v3 = vld [vmem:[%s128_s15 + $0x18] sm:$0xff]  ;;  %v181_v4 = vrot.slane %v162_v0, 4  ;;  %v187_v5 = vrot.slane %v163_v1, 4  ;;  %vm216_vm3 = vcmask 1043456   ;;  %vm222_vm4 = vcmask 3072  }
  0x29   : > { %v193_v6 = vrot.slane %v164_v2, 4  ;;  %v199_v7 = vrot.slane %v165_v3, 4  ;;  %p146_p7 = scmp.lt.s32.totalorder %s460_s9, 1 }
  0x2a   : > { %v182_v8 = vadd.f32 %v181_v4, %v162_v0  ;;  %v188_v9 = vadd.f32 %v187_v5, %v163_v1 }
  0x2b   : > { %v194_v10 = vadd.f32 %v193_v6, %v164_v2  ;;  %v200_v11 = vadd.f32 %v199_v7, %v165_v3  ;;  %s594_s9 = smov (!%p146_p7, %s460_s9), 1 }
  0x2c   : > { %v183_v12 = vrot.slane %v182_v8, 2  ;;  %v189_v13 = vrot.slane %v188_v9, 2  ;;  %s323_s17 = sshll.u32 %s594_s9, 2 }
  0x2d   : > { %v195_v14 = vrot.slane %v194_v10, 2  ;;  %v201_v15 = vrot.slane %v200_v11, 2  ;;  %s149_s22 = scalar_lea.vmem %s582_s1, %s323_s17 }
  0x2e   : > { %v184_v16 = vadd.f32 %v183_v12, %v182_v8  ;;  %v190_v17 = vadd.f32 %v189_v13, %v188_v9 }
  0x2f   : > { %v196_v18 = vadd.f32 %v195_v14, %v194_v10  ;;  %v202_v19 = vadd.f32 %v201_v15, %v200_v11 }
  0x30   : > { %v185_v20 = vrot.slane %v184_v16, 1  ;;  %v191_v21 = vrot.slane %v190_v17, 1 }
  0x31   : > { %v197_v22 = vrot.slane %v196_v18, 1  ;;  %v203_v23 = vrot.slane %v202_v19, 1 }
  0x32   : > { %v186_v24 = vadd.f32 %v185_v20, %v184_v16  ;;  %v192_v25 = vadd.f32 %v191_v21, %v190_v17 }
  0x33   : > { %v198_v26 = vadd.f32 %v197_v22, %v196_v18  ;;  %v204_v27 = vadd.f32 %v203_v23, %v202_v19 }
  0x34   : > { %v210_v28 = vsel %vm209_vm0, %v192_v25, %v186_v24 }
  0x35   : > { %v212_v29 = vsel %vm211_vm1, %v198_v26, %v210_v28 }
  0x36   : > { %v214_v30 = vsel %vm213_vm2, %v204_v27, %v212_v29 }
  0x37   : > { %v217_v31 = vsel %vm216_vm3, %v214_v30, 0.0 }
  0x38   : > { %218 = vadd.xlane.f32.xlu0 %v217_v31 }
  0xc1   : > { %v219_v32 = vpop.xlane.xlu0 %218 }
  0xc2   : > { %v220_v33 = vmul.f32 0.001953125, %v219_v32 }
  0xc4   : > { %v221_v34 = vmul.f32 %v220_v33, %v220_v33 }
  0xc6   : > { %v223_v35 = vsel %vm222_vm4, %v221_v34, 0.0 }
  0xc7   : > { %224 = vadd.xlane.f32.xlu0 %v223_v35 }
 0x150   : > { %v225_v36 = vpop.xlane.xlu0 %224 }
 0x151   : > { %v226_v37 = vrot.slane %v225_v36, 4 }
 0x153   : > { %v227_v38 = vadd.f32 %v226_v37, %v225_v36 }
 0x155   : > { %v228_v39 = vrot.slane %v227_v38, 2 }
 0x157   : > { %v229_v40 = vadd.f32 %v228_v39, %v227_v38 }
 0x159   : > { %v230_v41 = vrot.slane %v229_v40, 1 }
 0x15b   : > { %v231_v42 = vadd.f32 %v230_v41, %v229_v40 }
 0x15d   : > { %327 = vpush %v231_v42 }
 0x18e   : > { %s328_s16 = spop %327 }
 0x18f   : > { %v233_v43 = vstv %s328_s16 }
 0x190   : > { %388 = vrsqrt.f32 %v233_v43 }
 0x19d   : > { %v389_v44 = vpop.eup %388 }
 0x19e   : > { %329 = vpush %v389_v44 }
 0x1cf   : > { %s330_s19 = spop %329 }
 0x1d0   : > { %v236_v45 = vstv %s330_s19 }
 0x1d1   : > { %v237_v46 = vmul.f32 %v236_v45, %v220_v33 }
 0x1d3   : > { %238 = vst.msk [vmem:[%s149_s22] sm:$0xf] %vm222_vm4, %v237_v46 }
 0x1d4 PF: > { %s14_s11 = sadd.s32 1, %s468_s11   ;;  %s586_s6 = smov %s452_s7 }
 0x1d5   : > { %p11_p8 = scmp.ge.s32.totalorder %s14_s11, 4   ;;  %s587_s7 = smov %s456_s8 }
 0x1d6   : > { %s588_s8 = smov %s532_s18  ;;  %s589_s9 = smov %s464_s10 }
 0x1d7   : > { %s590_s10 = smov %s592_s13  ;;  %13 = sbr.rel (!%p11_p8) target bundleno = 4 (0x4), region = 72 }
 0x1dc   :  { %258 = vsyncpa [#allocation4], 1 }
 0x1dd   :  { %260 = vsyncpa [#allocation4 + $0x1], 1 }

</bundles_post_ra>
